<compile_context>
chip_gen: v6e
topology: v6e:2x2x1
jax: 0.10.0
libtpu: 0.0.40
codegen_flags: <defaults>
</compile_context>

<pallas_src>
import math

import jax
import jax.numpy as jnp
from jax.experimental import pallas as pl
from jax.experimental.pallas import tpu as pltpu


def _scale_exp_kernel(scale_ref, x_ref, o_ref):
    # scale_ref: (1,) f32 in SMEM ; x_ref / o_ref: (TM, LANE) tile in VMEM.
    s = scale_ref[0]                                   # scalar path
    o_ref[...] = jnp.exp(x_ref[...] * s).astype(o_ref.dtype)  # VPU mul + EUP exp


def _round_up(v: int, m: int) -> int:
    return ((v + m - 1) // m) * m


def scale_exp(x: jax.Array, scale: jax.Array, *,
              target_block_bytes: int = 4 << 20) -> jax.Array:
    """out = exp(x * scale). Elementwise, layout-agnostic (works for NCHW)."""
    orig_shape = x.shape
    total = math.prod(orig_shape)
    itemsize = jnp.dtype(x.dtype).itemsize
    # Sublane multiple for the second-to-last block dim, by dtype width.
    sub = {4: 8, 2: 16, 1: 32}.get(itemsize, 8)

    # Largest lane width (multiple of 128) dividing `total` exactly:
    # no padding copy, no trailing-slice copy, no wasted exp on pad elements.
    lane = None
    for cand in (1024, 512, 256, 128):
        if total % cand == 0:
            lane = cand
            break

    flat = x.reshape(-1)
    pad = 0
    if lane is None:
        # TODO(synk): element count not a multiple of 128; rare fallback pads
        # the flat buffer (one extra HBM pass) instead of a masked-tail kernel.
        lane = 128
        pad = (-total) % lane
        flat = jnp.pad(flat, (0, pad))

    rows = flat.size // lane
    x2d = flat.reshape(rows, lane)

    # Row tile: ~4 MiB f32 blocks amortize grid-step overhead on v7x/v6e;
    # double-buffered in+out = 16 MiB VMEM, within the explicit limit below.
    if rows <= sub:
        tm = rows                                  # full-extent block (legal)
    else:
        tile_rows = max(sub, (target_block_bytes // (lane * itemsize)) // sub * sub)
        tm = min(tile_rows, _round_up(rows, sub))
        if tm >= rows:
            # Whole slab fits one block: split into >=2 grid steps so both of
            # v7x's TensorCores stream their own HBM path.
            tm = min(_round_up(rows, sub), max(sub, _round_up(pl.cdiv(rows, 2), sub)))
    grid_m = pl.cdiv(rows, tm)

    out2d = pl.pallas_call(
        _scale_exp_kernel,
        out_shape=jax.ShapeDtypeStruct((rows, lane), x2d.dtype),
        grid=(grid_m,),
        in_specs=[
            pl.BlockSpec(memory_space=pltpu.MemorySpace.SMEM),   # scale (1,)
            pl.BlockSpec((tm, lane), lambda i: (i, 0)),           # x tile
        ],
        out_specs=pl.BlockSpec((tm, lane), lambda i: (i, 0)),
        compiler_params=pltpu.CompilerParams(
            dimension_semantics=("parallel",),
            vmem_limit_bytes=40 << 20,
        ),
        cost_estimate=pl.CostEstimate(
            flops=total,
            transcendentals=total,
            bytes_accessed=2 * total * itemsize,
        ),
    )(scale.astype(jnp.float32).reshape(1), x2d)

    out_flat = out2d.reshape(-1)
    if pad:
        out_flat = out_flat[:total]
    return out_flat.reshape(orig_shape)


if __name__ == "__main__":
    key = jax.random.PRNGKey(0)
    x = jax.random.normal(key, (2, 4, 16, 16), dtype=jnp.float32)

    # Deterministic parameter init, matching nn.Parameter(torch.tensor([1.0]))
    init_value = 1.0
    scale = jnp.array([init_value], dtype=jnp.float32)

    out = scale_exp(x, scale)
    out = jax.block_until_ready(out)

    # Reference check (pure JAX)
    ref = jnp.exp(x * scale[0])
    assert out.shape == x.shape and out.dtype == x.dtype
    assert jnp.allclose(out, ref, rtol=1e-6, atol=1e-6)

    print("KERNEL_OK")
</pallas_src>

<mosaic_0001>
module attributes {stable_mosaic.version = 11 : i64} {
  func.func @_scale_exp_kernel(%arg0: i32, %arg1: memref<1xf32, #tpu.memory_space<smem>>, %arg2: memref<2x1024xf32, #tpu.memory_space<vmem>>, %arg3: memref<2x1024xf32, #tpu.memory_space<vmem>>) attributes {dimension_semantics = [#tpu.dimension_semantics<parallel>], iteration_bounds = array<i64: 1>, scalar_prefetch = 0 : i64, scratch_operands = 0 : i64, tpu.core_type = #tpu.core_type<tc>, window_params = [{transform_indices = @transform_0, window_bounds = array<i64: 1>}, {transform_indices = @transform_1, window_bounds = array<i64: 2, 1024>}, {transform_indices = @transform_2, window_bounds = array<i64: 2, 1024>}]} {
    %c0 = arith.constant 0 : index
    %0 = memref.load %arg1[%c0] : memref<1xf32, #tpu.memory_space<smem>>
    %c0_0 = arith.constant 0 : index
    %c0_1 = arith.constant 0 : index
    %1 = vector.load %arg2[%c0_0, %c0_1] : memref<2x1024xf32, #tpu.memory_space<vmem>>, vector<2x1024xf32>
    %2 = vector.broadcast %0 : f32 to vector<2x1024xf32>
    %3 = arith.mulf %1, %2 : vector<2x1024xf32>
    %4 = math.exp %3 : vector<2x1024xf32>
    %c0_2 = arith.constant 0 : index
    %c0_3 = arith.constant 0 : index
    %5 = vector.load %arg3[%c0_2, %c0_3] : memref<2x1024xf32, #tpu.memory_space<vmem>>, vector<2x1024xf32>
    tpu.vector_store %arg3[%c0_2, %c0_3], %4 {strides = array<i32>} : memref<2x1024xf32, #tpu.memory_space<vmem>>, vector<2x1024xf32>,
    return
  }
  func.func @transform_0(%arg0: i32) -> i32 {
    %c0_i32 = arith.constant 0 : i32
    %c0_i32_0 = arith.constant 0 : i32
    return %c0_i32 : i32
  }
  func.func @transform_1(%arg0: i32) -> (i32, i32) {
    %c0_i32 = arith.constant 0 : i32
    %c0_i32_0 = arith.constant 0 : i32
    return %arg0, %c0_i32 : i32, i32
  }
  func.func @transform_2(%arg0: i32) -> (i32, i32) {
    %c0_i32 = arith.constant 0 : i32
    %c0_i32_0 = arith.constant 0 : i32
    return %arg0, %c0_i32 : i32, i32
  }
}

</mosaic_0001>

<bundles_post_ra>
// kernel: tpu_custom_call.1
= control target key start
LH: loop header
LB: loop body
LE: loop exit
PB: predicated region body
PF: predicated region fallthrough
CT: control target
= control target key end

     0   :  { %8 = vsyncpa [#allocation4], 0  ;;  %s128_s0 = inlined_call_operand.<no memory space> [shape: f32[1], index: 0, kind: input, shape index: {}]   ;;  %s129_s1 = inlined_call_operand.hbm [shape: f32[2,1024], index: 1, kind: input, shape index: {}]   ;;  %s130_s2 = inlined_call_operand.hbm [shape: f32[2,1024], index: 2, kind: output, shape index: {}]  }
   0x1   :  { %9 = vsyncpa [#allocation5], 0  ;;  %s102_s9 = smov [#allocation3]  }
   0x2   :  { %s18_s10 = sshll.u32 %s102_s9, 4  ;;  %s19_s10 = int_to_ptr.vmem [resolvable:$true] %s18_s10 }
   0x3   :  { %s66_s11 = scalar_lea.vmem %s19_s10, 256  ;;  %p71_p1 = scmp.lt.s32.totalorder %s19_s10, %s19_s10 }
   0x4   :  { %p67_p0 = scmp.ne.s32.totalorder %s19_s10, %s66_s11  ;;  %p72_p2 = scmp.lt.s32.totalorder %s66_s11, %s66_s11 }
   0x6   :  { %p73_p3 = por %p72_p2, %p71_p1 }
   0x8   :  { %p74_p4 = pnand %p73_p3, %p67_p0 }
   0xa   :  { %77 = shalt.err (!%p74_p4)
}
   0xb   :  { %21 = dma.hbm_to_vmem [thread:$0]  %s129_s1, 256, %s19_s10, [#allocation4]  }
   0xc   :  { %98 = dma.done.wait [#allocation4], 256  }
   0xd   :  { %99 = vsyncadd [#allocation4], 4294967040  ;;  %v28_v0 = vstv %s128_s0  ;;  %v26_v1 = vld [vmem:[#allocation3] sm:$0xff]  ;;  %v27_v2 = vld [vmem:[#allocation3 + $0x8] sm:$0xff]  ;;  %s103_s16 = smov [#allocation6]  }
   0xe   :  { %v29_v3 = vmul.f32 %v28_v0, %v26_v1  ;;  %v30_v4 = vmul.f32 %v28_v0, %v27_v2  ;;  %s43_s17 = sshll.u32 %s103_s16, 4  ;;  %s44_s17 = int_to_ptr.vmem [resolvable:$true] %s43_s17 }
   0xf   :  { %s78_s1 = scalar_lea.vmem %s44_s17, 256  ;;  %p83_p6 = scmp.lt.s32.totalorder %s44_s17, %s44_s17 }
  0x10   :  { %v31_v5 = vmul.f32 1.442695, %v29_v3  ;;  %v33_v6 = vmul.f32 1.442695, %v30_v4  ;;  %p79_p5 = scmp.ne.s32.totalorder %s44_s17, %s78_s1  ;;  %p84_p7 = scmp.lt.s32.totalorder %s78_s1, %s78_s1 }
  0x12   :  { %54 = vpow2.f32 %v31_v5  ;;  %p85_p8 = por %p84_p7, %p83_p6 }
  0x13   :  { %56 = vpow2.f32 %v33_v6 }
  0x14   :  { %p86_p9 = pnand %p85_p8, %p79_p5 }
  0x1f   :  { %v55_v7 = vpop.eup %54 }
  0x20   :  { %v57_v8 = vpop.eup %56  ;;  %35 = vst [vmem:[#allocation6] sm:$0xff] %v55_v7 }
  0x21   :  { %36 = vst [vmem:[#allocation6 + $0x8] sm:$0xff] %v57_v8 }
  0x22   :  { %89 = shalt.err (!%p86_p9)
}
  0x23   :  { %46 = dma.vmem_to_hbm [thread:$0]  %s44_s17, 256, %s130_s2, [#allocation5]  }
  0x24   :  { %100 = dma.done.wait [#allocation5], 256  }
  0x25   :  { %101 = vsyncadd [#allocation5], 4294967040 }
  0x26   :  { %50 = vsyncpa [#allocation4], 1 }
  0x27   :  { %51 = vsyncpa [#allocation5], 1 }

</bundles_post_ra>
